<compile_context>
chip_gen: v7x
topology: tpu7x:2x2x1
jax: 0.10.0
libtpu: 0.0.40
codegen_flags: <defaults>
</compile_context>

<pallas_src>
import jax
import jax.numpy as jnp
from jax.experimental import pallas as pl
from jax.experimental.pallas import tpu as pltpu


def _pick_batch_block(n, cap=8):
    """Largest divisor of n not exceeding cap (batch elements per grid step)."""
    for b in range(min(n, cap), 0, -1):
        if n % b == 0:
            return b
    return 1


def _make_kernel(K, C, V, pad, B, L_x, L_out):
    """Kernel closure over static conv geometry.

    K      : temporal kernel size
    C      : input channels
    V      : joints (lane stride of one frame)
    pad    : (K-1)//2 symmetric temporal padding
    B      : batch elements per grid step
    L_x    : T*V      (input lane width, unpadded)
    L_out  : ceil(T*V/128)*128 (output lane width, 128-aligned)
    """
    KC = K * C

    def kernel(x_ref, w_ref, o_ref, rhs_ref):
        # x_ref:   (B, C, L_x)       unpadded input, lanes = T*V
        # w_ref:   (O, KC+1)         BN-folded weights, last column = folded bias
        # o_ref:   (B, O, L_out)     lane-dense output
        # rhs_ref: (KC+1, B*L_out)   im2col scratch (row KC is the ones/bias row)
        if L_out != L_x:  # static branch; only taken on the general (padded-lane) path
            rhs_ref[...] = jnp.zeros_like(rhs_ref)

        # Lane index, built once and reused for all tap masks.
        lane = jax.lax.broadcasted_iota(jnp.int32, (C, L_x), 1)

        for b in range(B):                       # static unroll over batch block
            xb = x_ref[b]                        # (C, L_x)
            for k in range(K):                   # static unroll over temporal taps
                s = k - pad                      # frame shift, -pad..+pad
                if s == 0:
                    slab = xb
                else:
                    rolled = pltpu.roll(xb, shift=(-s * V) % L_x, axis=1)
                    if s > 0:                    # zero the right (future) pad region
                        slab = jnp.where(lane < L_x - s * V, rolled, 0.0)
                    else:                        # zero the left (past) pad region
                        slab = jnp.where(lane >= (-s) * V, rolled, 0.0)
                rhs_ref[pl.ds(k * C, C), pl.ds(b * L_out, L_x)] = slab

        # Bias row: ones, so the single matmul produces conv + bias directly.
        rhs_ref[pl.ds(KC, 1), :] = jnp.ones((1, B * L_out), jnp.float32)

        # One MXU matmul for all K taps, all C channels and all B batches.
        acc = jnp.dot(w_ref[...], rhs_ref[...],
                      preferred_element_type=jnp.float32)      # (O, B*L_out)

        for b in range(B):                       # 128-aligned lane slices -> clean stores
            o_ref[b] = acc[:, b * L_out:(b + 1) * L_out].astype(o_ref.dtype)

    return kernel


def temporal_conv(x, params, *, kernel_size=9, stride=1):
    """x: (N, C, T, V) f32 -> (N, out_channels, T_out, V) f32 (conv + eval BN)."""
    N, C, T, V = x.shape
    K = kernel_size
    pad = (K - 1) // 2
    eps = 1e-5
    W = params['w']                                  # (O, C, K)
    O = W.shape[0]

    # Fold eval-mode BatchNorm into the conv weight and bias (one-time, wrapper-side).
    scale = params['bn_gamma'] / jnp.sqrt(params['bn_var'] + eps)            # (O,)
    shift = params['bn_beta'] - params['bn_mean'] * scale                    # (O,)
    w_tap = (W * scale[:, None, None]).transpose(0, 2, 1).reshape(O, K * C)  # rows k*C+c
    b_fold = params['b'] * scale + shift                                     # (O,)
    w_full = jnp.concatenate([w_tap, b_fold[:, None]], axis=1)               # (O, K*C+1)
    w_full = w_full.astype(jnp.float32)

    # No wrapper-side padding: a contiguous (free) reshape only.  Time padding is
    # applied in-kernel via roll + mask.
    L_x = T * V
    L_out = ((L_x + 127) // 128) * 128               # 128-aligned output lane width
    x_flat = x.reshape(N, C, L_x).astype(jnp.float32)

    B = _pick_batch_block(N)
    grid = (N // B,)

    kernel = _make_kernel(K, C, V, pad, B, L_x, L_out)

    grid_spec = pltpu.PrefetchScalarGridSpec(
        num_scalar_prefetch=0,
        grid=grid,
        in_specs=[
            pl.BlockSpec((B, C, L_x), lambda n: (n, 0, 0)),       # per-step batch block
            pl.BlockSpec((O, K * C + 1), lambda n: (0, 0)),       # resident folded weights
        ],
        out_specs=pl.BlockSpec((B, O, L_out), lambda n: (n, 0, 0)),
        scratch_shapes=[pltpu.VMEM((K * C + 1, B * L_out), jnp.float32)],  # im2col RHS
    )

    out_flat = pl.pallas_call(
        kernel,
        out_shape=jax.ShapeDtypeStruct((N, O, L_out), jnp.float32),
        grid_spec=grid_spec,
        compiler_params=pltpu.CompilerParams(dimension_semantics=("parallel",)),
    )(x_flat, w_full)

    out = out_flat[:, :, :L_x].reshape(N, O, T, V)   # trim is a no-op when T*V % 128 == 0
    if stride != 1:
        out = out[:, :, ::stride, :]                 # stride-s conv == stride-1 subsampled
    return out


def init_params(key, in_channels, out_channels, kernel_size=9):
    """Synthetic parameters matching the module's shapes / init scheme."""
    ks = jax.random.split(key, 3)
    fan_out = out_channels * kernel_size * 1                       # kaiming_normal(fan_out)
    std = (2.0 / fan_out) ** 0.5
    w = jax.random.normal(ks[0], (out_channels, in_channels, kernel_size),
                          jnp.float32) * std
    b = jnp.zeros((out_channels,), jnp.float32)                    # conv_init: bias = 0
    # bn_init(bn, 1): gamma=1, beta=0.  Running stats perturbed slightly so the
    # eval-mode BN folding path is actually exercised by the check.
    gamma = jnp.ones((out_channels,), jnp.float32)
    beta = jnp.zeros((out_channels,), jnp.float32)
    mean = 0.1 * jax.random.normal(ks[1], (out_channels,), jnp.float32)
    var = 1.0 + 0.1 * jax.random.uniform(ks[2], (out_channels,), jnp.float32)
    return dict(w=w, b=b, bn_gamma=gamma, bn_beta=beta, bn_mean=mean, bn_var=var)


def reference(x, p, *, kernel_size=9, stride=1):
    """Pure-JAX re-implementation of the PyTorch forward (eval-mode BN)."""
    K = kernel_size
    pad = (K - 1) // 2
    eps = 1e-5
    w4 = p['w'][:, :, :, None]                                   # (O, C, K, 1) OIHW
    y = jax.lax.conv_general_dilated(
        x, w4, window_strides=(stride, 1), padding=((pad, pad), (0, 0)),
        dimension_numbers=('NCHW', 'OIHW', 'NCHW'))
    y = y + p['b'][None, :, None, None]
    s = p['bn_gamma'] / jnp.sqrt(p['bn_var'] + eps)
    b = p['bn_beta'] - p['bn_mean'] * s
    return y * s[None, :, None, None] + b[None, :, None, None]


if __name__ == "__main__":
    N, C, T, V = 2, 4, 8, 16          # batch, in_channels, frames, joints
    out_channels = 16
    kernel_size, stride = 9, 1

    key = jax.random.PRNGKey(0)
    kx, kp = jax.random.split(key)
    x = jax.random.normal(kx, (N, C, T, V), jnp.float32)
    params = init_params(kp, C, out_channels, kernel_size=kernel_size)

    y = temporal_conv(x, params, kernel_size=kernel_size, stride=stride)
    y = jax.block_until_ready(y)

    y_ref = reference(x, params, kernel_size=kernel_size, stride=stride)
    assert y.shape == y_ref.shape == (N, out_channels, T, V)
    err = float(jnp.max(jnp.abs(y - y_ref)))
    assert jnp.allclose(y, y_ref, rtol=1e-4, atol=1e-4), err
    print("KERNEL_OK")
</pallas_src>

<mosaic_0001>
module attributes {stable_mosaic.version = 11 : i64} {
  func.func @kernel(%arg0: i32, %arg1: memref<2x4x128xf32, #tpu.memory_space<vmem>>, %arg2: memref<16x37xf32, #tpu.memory_space<vmem>>, %arg3: memref<2x16x128xf32, #tpu.memory_space<vmem>>, %arg4: memref<37x256xf32, #tpu.memory_space<vmem>>) attributes {dimension_semantics = [#tpu.dimension_semantics<parallel>], iteration_bounds = array<i64: 1>, scalar_prefetch = 0 : i64, scratch_operands = 1 : i64, tpu.core_type = #tpu.core_type<tc>, window_params = [{transform_indices = @transform_0, window_bounds = array<i64: 2, 4, 128>}, {pipeline_mode = #tpu.pipeline_mode<synchronous>, transform_indices = @transform_1, window_bounds = array<i64: 16, 37>}, {transform_indices = @transform_2, window_bounds = array<i64: 2, 16, 128>}]} {
    %0 = tpu.iota {dimensions = array<i32: 1>} : vector<4x128xi32>
    %c0 = arith.constant 0 : index
    %c0_0 = arith.constant 0 : index
    %c0_1 = arith.constant 0 : index
    %1 = vector.load %arg1[%c0, %c0_0, %c0_1] : memref<2x4x128xf32, #tpu.memory_space<vmem>>, vector<1x4x128xf32>
    %2 = vector.shape_cast %1 : vector<1x4x128xf32> to vector<4x128xf32>
    %c64_i32 = arith.constant 64 : i32
    %3 = tpu.dynamic_rotate %2 by %c64_i32 dim 1 : vector<4x128xf32>, i32 -> vector<4x128xf32>
    %c64_i32_2 = arith.constant 64 : i32
    %4 = vector.broadcast %c64_i32_2 : i32 to vector<4x128xi32>
    %5 = arith.cmpi sge, %0, %4 : vector<4x128xi32>
    %cst = arith.constant 0.000000e+00 : f32
    %6 = vector.broadcast %cst : f32 to vector<4x128xf32>
    %7 = arith.select %5, %3, %6 : vector<4x128xi1>, vector<4x128xf32>
    %c0_3 = arith.constant 0 : index
    %c0_4 = arith.constant 0 : index
    %8 = vector.load %arg4[%c0_3, %c0_4] : memref<37x256xf32, #tpu.memory_space<vmem>>, vector<4x128xf32>
    tpu.vector_store %arg4[%c0_3, %c0_4], %7 {strides = array<i32>} : memref<37x256xf32, #tpu.memory_space<vmem>>, vector<4x128xf32>,
    %c48_i32 = arith.constant 48 : i32
    %9 = tpu.dynamic_rotate %2 by %c48_i32 dim 1 : vector<4x128xf32>, i32 -> vector<4x128xf32>
    %c48_i32_5 = arith.constant 48 : i32
    %10 = vector.broadcast %c48_i32_5 : i32 to vector<4x128xi32>
    %11 = arith.cmpi sge, %0, %10 : vector<4x128xi32>
    %cst_6 = arith.constant 0.000000e+00 : f32
    %12 = vector.broadcast %cst_6 : f32 to vector<4x128xf32>
    %13 = arith.select %11, %9, %12 : vector<4x128xi1>, vector<4x128xf32>
    %c4 = arith.constant 4 : index
    %c0_7 = arith.constant 0 : index
    %14 = vector.load %arg4[%c4, %c0_7] : memref<37x256xf32, #tpu.memory_space<vmem>>, vector<4x128xf32>
    tpu.vector_store %arg4[%c4, %c0_7], %13 {strides = array<i32>} : memref<37x256xf32, #tpu.memory_space<vmem>>, vector<4x128xf32>,
    %c32_i32 = arith.constant 32 : i32
    %15 = tpu.dynamic_rotate %2 by %c32_i32 dim 1 : vector<4x128xf32>, i32 -> vector<4x128xf32>
    %c32_i32_8 = arith.constant 32 : i32
    %16 = vector.broadcast %c32_i32_8 : i32 to vector<4x128xi32>
    %17 = arith.cmpi sge, %0, %16 : vector<4x128xi32>
    %cst_9 = arith.constant 0.000000e+00 : f32
    %18 = vector.broadcast %cst_9 : f32 to vector<4x128xf32>
    %19 = arith.select %17, %15, %18 : vector<4x128xi1>, vector<4x128xf32>
    %c8 = arith.constant 8 : index
    %c0_10 = arith.constant 0 : index
    %20 = vector.load %arg4[%c8, %c0_10] : memref<37x256xf32, #tpu.memory_space<vmem>>, vector<4x128xf32>
    tpu.vector_store %arg4[%c8, %c0_10], %19 {strides = array<i32>} : memref<37x256xf32, #tpu.memory_space<vmem>>, vector<4x128xf32>,
    %c16_i32 = arith.constant 16 : i32
    %21 = tpu.dynamic_rotate %2 by %c16_i32 dim 1 : vector<4x128xf32>, i32 -> vector<4x128xf32>
    %c16_i32_11 = arith.constant 16 : i32
    %22 = vector.broadcast %c16_i32_11 : i32 to vector<4x128xi32>
    %23 = arith.cmpi sge, %0, %22 : vector<4x128xi32>
    %cst_12 = arith.constant 0.000000e+00 : f32
    %24 = vector.broadcast %cst_12 : f32 to vector<4x128xf32>
    %25 = arith.select %23, %21, %24 : vector<4x128xi1>, vector<4x128xf32>
    %c12 = arith.constant 12 : index
    %c0_13 = arith.constant 0 : index
    %26 = vector.load %arg4[%c12, %c0_13] : memref<37x256xf32, #tpu.memory_space<vmem>>, vector<4x128xf32>
    tpu.vector_store %arg4[%c12, %c0_13], %25 {strides = array<i32>} : memref<37x256xf32, #tpu.memory_space<vmem>>, vector<4x128xf32>,
    %c16 = arith.constant 16 : index
    %c0_14 = arith.constant 0 : index
    %27 = vector.load %arg4[%c16, %c0_14] : memref<37x256xf32, #tpu.memory_space<vmem>>, vector<4x128xf32>
    tpu.vector_store %arg4[%c16, %c0_14], %2 {strides = array<i32>} : memref<37x256xf32, #tpu.memory_space<vmem>>, vector<4x128xf32>,
    %c112_i32 = arith.constant 112 : i32
    %28 = tpu.dynamic_rotate %2 by %c112_i32 dim 1 : vector<4x128xf32>, i32 -> vector<4x128xf32>
    %c112_i32_15 = arith.constant 112 : i32
    %29 = vector.broadcast %c112_i32_15 : i32 to vector<4x128xi32>
    %30 = arith.cmpi slt, %0, %29 : vector<4x128xi32>
    %cst_16 = arith.constant 0.000000e+00 : f32
    %31 = vector.broadcast %cst_16 : f32 to vector<4x128xf32>
    %32 = arith.select %30, %28, %31 : vector<4x128xi1>, vector<4x128xf32>
    %c20 = arith.constant 20 : index
    %c0_17 = arith.constant 0 : index
    %33 = vector.load %arg4[%c20, %c0_17] : memref<37x256xf32, #tpu.memory_space<vmem>>, vector<4x128xf32>
    tpu.vector_store %arg4[%c20, %c0_17], %32 {strides = array<i32>} : memref<37x256xf32, #tpu.memory_space<vmem>>, vector<4x128xf32>,
    %c96_i32 = arith.constant 96 : i32
    %34 = tpu.dynamic_rotate %2 by %c96_i32 dim 1 : vector<4x128xf32>, i32 -> vector<4x128xf32>
    %c96_i32_18 = arith.constant 96 : i32
    %35 = vector.broadcast %c96_i32_18 : i32 to vector<4x128xi32>
    %36 = arith.cmpi slt, %0, %35 : vector<4x128xi32>
    %cst_19 = arith.constant 0.000000e+00 : f32
    %37 = vector.broadcast %cst_19 : f32 to vector<4x128xf32>
    %38 = arith.select %36, %34, %37 : vector<4x128xi1>, vector<4x128xf32>
    %c24 = arith.constant 24 : index
    %c0_20 = arith.constant 0 : index
    %39 = vector.load %arg4[%c24, %c0_20] : memref<37x256xf32, #tpu.memory_space<vmem>>, vector<4x128xf32>
    tpu.vector_store %arg4[%c24, %c0_20], %38 {strides = array<i32>} : memref<37x256xf32, #tpu.memory_space<vmem>>, vector<4x128xf32>,
    %c80_i32 = arith.constant 80 : i32
    %40 = tpu.dynamic_rotate %2 by %c80_i32 dim 1 : vector<4x128xf32>, i32 -> vector<4x128xf32>
    %c80_i32_21 = arith.constant 80 : i32
    %41 = vector.broadcast %c80_i32_21 : i32 to vector<4x128xi32>
    %42 = arith.cmpi slt, %0, %41 : vector<4x128xi32>
    %cst_22 = arith.constant 0.000000e+00 : f32
    %43 = vector.broadcast %cst_22 : f32 to vector<4x128xf32>
    %44 = arith.select %42, %40, %43 : vector<4x128xi1>, vector<4x128xf32>
    %c28 = arith.constant 28 : index
    %c0_23 = arith.constant 0 : index
    %45 = vector.load %arg4[%c28, %c0_23] : memref<37x256xf32, #tpu.memory_space<vmem>>, vector<4x128xf32>
    tpu.vector_store %arg4[%c28, %c0_23], %44 {strides = array<i32>} : memref<37x256xf32, #tpu.memory_space<vmem>>, vector<4x128xf32>,
    %c64_i32_24 = arith.constant 64 : i32
    %46 = tpu.dynamic_rotate %2 by %c64_i32_24 dim 1 : vector<4x128xf32>, i32 -> vector<4x128xf32>
    %c64_i32_25 = arith.constant 64 : i32
    %47 = vector.broadcast %c64_i32_25 : i32 to vector<4x128xi32>
    %48 = arith.cmpi slt, %0, %47 : vector<4x128xi32>
    %cst_26 = arith.constant 0.000000e+00 : f32
    %49 = vector.broadcast %cst_26 : f32 to vector<4x128xf32>
    %50 = arith.select %48, %46, %49 : vector<4x128xi1>, vector<4x128xf32>
    %c32 = arith.constant 32 : index
    %c0_27 = arith.constant 0 : index
    %51 = vector.load %arg4[%c32, %c0_27] : memref<37x256xf32, #tpu.memory_space<vmem>>, vector<4x128xf32>
    tpu.vector_store %arg4[%c32, %c0_27], %50 {strides = array<i32>} : memref<37x256xf32, #tpu.memory_space<vmem>>, vector<4x128xf32>,
    %c1 = arith.constant 1 : index
    %c0_28 = arith.constant 0 : index
    %c0_29 = arith.constant 0 : index
    %52 = vector.load %arg1[%c1, %c0_28, %c0_29] : memref<2x4x128xf32, #tpu.memory_space<vmem>>, vector<1x4x128xf32>
    %53 = vector.shape_cast %52 : vector<1x4x128xf32> to vector<4x128xf32>
    %c64_i32_30 = arith.constant 64 : i32
    %54 = tpu.dynamic_rotate %53 by %c64_i32_30 dim 1 : vector<4x128xf32>, i32 -> vector<4x128xf32>
    %c64_i32_31 = arith.constant 64 : i32
    %55 = vector.broadcast %c64_i32_31 : i32 to vector<4x128xi32>
    %56 = arith.cmpi sge, %0, %55 : vector<4x128xi32>
    %cst_32 = arith.constant 0.000000e+00 : f32
    %57 = vector.broadcast %cst_32 : f32 to vector<4x128xf32>
    %58 = arith.select %56, %54, %57 : vector<4x128xi1>, vector<4x128xf32>
    %c0_33 = arith.constant 0 : index
    %c128 = arith.constant 128 : index
    %59 = vector.load %arg4[%c0_33, %c128] : memref<37x256xf32, #tpu.memory_space<vmem>>, vector<4x128xf32>
    tpu.vector_store %arg4[%c0_33, %c128], %58 {strides = array<i32>} : memref<37x256xf32, #tpu.memory_space<vmem>>, vector<4x128xf32>,
    %c48_i32_34 = arith.constant 48 : i32
    %60 = tpu.dynamic_rotate %53 by %c48_i32_34 dim 1 : vector<4x128xf32>, i32 -> vector<4x128xf32>
    %c48_i32_35 = arith.constant 48 : i32
    %61 = vector.broadcast %c48_i32_35 : i32 to vector<4x128xi32>
    %62 = arith.cmpi sge, %0, %61 : vector<4x128xi32>
    %cst_36 = arith.constant 0.000000e+00 : f32
    %63 = vector.broadcast %cst_36 : f32 to vector<4x128xf32>
    %64 = arith.select %62, %60, %63 : vector<4x128xi1>, vector<4x128xf32>
    %c4_37 = arith.constant 4 : index
    %c128_38 = arith.constant 128 : index
    %65 = vector.load %arg4[%c4_37, %c128_38] : memref<37x256xf32, #tpu.memory_space<vmem>>, vector<4x128xf32>
    tpu.vector_store %arg4[%c4_37, %c128_38], %64 {strides = array<i32>} : memref<37x256xf32, #tpu.memory_space<vmem>>, vector<4x128xf32>,
    %c32_i32_39 = arith.constant 32 : i32
    %66 = tpu.dynamic_rotate %53 by %c32_i32_39 dim 1 : vector<4x128xf32>, i32 -> vector<4x128xf32>
    %c32_i32_40 = arith.constant 32 : i32
    %67 = vector.broadcast %c32_i32_40 : i32 to vector<4x128xi32>
    %68 = arith.cmpi sge, %0, %67 : vector<4x128xi32>
    %cst_41 = arith.constant 0.000000e+00 : f32
    %69 = vector.broadcast %cst_41 : f32 to vector<4x128xf32>
    %70 = arith.select %68, %66, %69 : vector<4x128xi1>, vector<4x128xf32>
    %c8_42 = arith.constant 8 : index
    %c128_43 = arith.constant 128 : index
    %71 = vector.load %arg4[%c8_42, %c128_43] : memref<37x256xf32, #tpu.memory_space<vmem>>, vector<4x128xf32>
    tpu.vector_store %arg4[%c8_42, %c128_43], %70 {strides = array<i32>} : memref<37x256xf32, #tpu.memory_space<vmem>>, vector<4x128xf32>,
    %c16_i32_44 = arith.constant 16 : i32
    %72 = tpu.dynamic_rotate %53 by %c16_i32_44 dim 1 : vector<4x128xf32>, i32 -> vector<4x128xf32>
    %c16_i32_45 = arith.constant 16 : i32
    %73 = vector.broadcast %c16_i32_45 : i32 to vector<4x128xi32>
    %74 = arith.cmpi sge, %0, %73 : vector<4x128xi32>
    %cst_46 = arith.constant 0.000000e+00 : f32
    %75 = vector.broadcast %cst_46 : f32 to vector<4x128xf32>
    %76 = arith.select %74, %72, %75 : vector<4x128xi1>, vector<4x128xf32>
    %c12_47 = arith.constant 12 : index
    %c128_48 = arith.constant 128 : index
    %77 = vector.load %arg4[%c12_47, %c128_48] : memref<37x256xf32, #tpu.memory_space<vmem>>, vector<4x128xf32>
    tpu.vector_store %arg4[%c12_47, %c128_48], %76 {strides = array<i32>} : memref<37x256xf32, #tpu.memory_space<vmem>>, vector<4x128xf32>,
    %c16_49 = arith.constant 16 : index
    %c128_50 = arith.constant 128 : index
    %78 = vector.load %arg4[%c16_49, %c128_50] : memref<37x256xf32, #tpu.memory_space<vmem>>, vector<4x128xf32>
    tpu.vector_store %arg4[%c16_49, %c128_50], %53 {strides = array<i32>} : memref<37x256xf32, #tpu.memory_space<vmem>>, vector<4x128xf32>,
    %c112_i32_51 = arith.constant 112 : i32
    %79 = tpu.dynamic_rotate %53 by %c112_i32_51 dim 1 : vector<4x128xf32>, i32 -> vector<4x128xf32>
    %c112_i32_52 = arith.constant 112 : i32
    %80 = vector.broadcast %c112_i32_52 : i32 to vector<4x128xi32>
    %81 = arith.cmpi slt, %0, %80 : vector<4x128xi32>
    %cst_53 = arith.constant 0.000000e+00 : f32
    %82 = vector.broadcast %cst_53 : f32 to vector<4x128xf32>
    %83 = arith.select %81, %79, %82 : vector<4x128xi1>, vector<4x128xf32>
    %c20_54 = arith.constant 20 : index
    %c128_55 = arith.constant 128 : index
    %84 = vector.load %arg4[%c20_54, %c128_55] : memref<37x256xf32, #tpu.memory_space<vmem>>, vector<4x128xf32>
    tpu.vector_store %arg4[%c20_54, %c128_55], %83 {strides = array<i32>} : memref<37x256xf32, #tpu.memory_space<vmem>>, vector<4x128xf32>,
    %c96_i32_56 = arith.constant 96 : i32
    %85 = tpu.dynamic_rotate %53 by %c96_i32_56 dim 1 : vector<4x128xf32>, i32 -> vector<4x128xf32>
    %c96_i32_57 = arith.constant 96 : i32
    %86 = vector.broadcast %c96_i32_57 : i32 to vector<4x128xi32>
    %87 = arith.cmpi slt, %0, %86 : vector<4x128xi32>
    %cst_58 = arith.constant 0.000000e+00 : f32
    %88 = vector.broadcast %cst_58 : f32 to vector<4x128xf32>
    %89 = arith.select %87, %85, %88 : vector<4x128xi1>, vector<4x128xf32>
    %c24_59 = arith.constant 24 : index
    %c128_60 = arith.constant 128 : index
    %90 = vector.load %arg4[%c24_59, %c128_60] : memref<37x256xf32, #tpu.memory_space<vmem>>, vector<4x128xf32>
    tpu.vector_store %arg4[%c24_59, %c128_60], %89 {strides = array<i32>} : memref<37x256xf32, #tpu.memory_space<vmem>>, vector<4x128xf32>,
    %c80_i32_61 = arith.constant 80 : i32
    %91 = tpu.dynamic_rotate %53 by %c80_i32_61 dim 1 : vector<4x128xf32>, i32 -> vector<4x128xf32>
    %c80_i32_62 = arith.constant 80 : i32
    %92 = vector.broadcast %c80_i32_62 : i32 to vector<4x128xi32>
    %93 = arith.cmpi slt, %0, %92 : vector<4x128xi32>
    %cst_63 = arith.constant 0.000000e+00 : f32
    %94 = vector.broadcast %cst_63 : f32 to vector<4x128xf32>
    %95 = arith.select %93, %91, %94 : vector<4x128xi1>, vector<4x128xf32>
    %c28_64 = arith.constant 28 : index
    %c128_65 = arith.constant 128 : index
    %96 = vector.load %arg4[%c28_64, %c128_65] : memref<37x256xf32, #tpu.memory_space<vmem>>, vector<4x128xf32>
    tpu.vector_store %arg4[%c28_64, %c128_65], %95 {strides = array<i32>} : memref<37x256xf32, #tpu.memory_space<vmem>>, vector<4x128xf32>,
    %c64_i32_66 = arith.constant 64 : i32
    %97 = tpu.dynamic_rotate %53 by %c64_i32_66 dim 1 : vector<4x128xf32>, i32 -> vector<4x128xf32>
    %c64_i32_67 = arith.constant 64 : i32
    %98 = vector.broadcast %c64_i32_67 : i32 to vector<4x128xi32>
    %99 = arith.cmpi slt, %0, %98 : vector<4x128xi32>
    %cst_68 = arith.constant 0.000000e+00 : f32
    %100 = vector.broadcast %cst_68 : f32 to vector<4x128xf32>
    %101 = arith.select %99, %97, %100 : vector<4x128xi1>, vector<4x128xf32>
    %c32_69 = arith.constant 32 : index
    %c128_70 = arith.constant 128 : index
    %102 = vector.load %arg4[%c32_69, %c128_70] : memref<37x256xf32, #tpu.memory_space<vmem>>, vector<4x128xf32>
    tpu.vector_store %arg4[%c32_69, %c128_70], %101 {strides = array<i32>} : memref<37x256xf32, #tpu.memory_space<vmem>>, vector<4x128xf32>,
    %cst_71 = arith.constant 1.000000e+00 : f32
    %103 = vector.broadcast %cst_71 : f32 to vector<1x256xf32>
    %c36 = arith.constant 36 : index
    %c0_72 = arith.constant 0 : index
    %104 = vector.load %arg4[%c36, %c0_72] : memref<37x256xf32, #tpu.memory_space<vmem>>, vector<1x256xf32>
    tpu.vector_store %arg4[%c36, %c0_72], %103 {strides = array<i32>} : memref<37x256xf32, #tpu.memory_space<vmem>>, vector<1x256xf32>,
    %c0_73 = arith.constant 0 : index
    %c0_74 = arith.constant 0 : index
    %105 = vector.load %arg2[%c0_73, %c0_74] : memref<16x37xf32, #tpu.memory_space<vmem>>, vector<16x37xf32>
    %c0_75 = arith.constant 0 : index
    %c0_76 = arith.constant 0 : index
    %106 = vector.load %arg4[%c0_75, %c0_76] : memref<37x256xf32, #tpu.memory_space<vmem>>, vector<37x256xf32>
    %cst_77 = arith.constant dense<0.000000e+00> : vector<16x256xf32>
    %107 = tpu.matmul %105, %106, %cst_77 {dimension_numbers = #tpu.dot_dimension_numbers<[1], [0], [0], [1], [0, 0, 1, 1], [], []>} : vector<16x37xf32>, vector<37x256xf32>, vector<16x256xf32> -> vector<16x256xf32>
    %108 = vector.extract_strided_slice %107 {offsets = [0, 0], sizes = [16, 128], strides = [1, 1]} : vector<16x256xf32> to vector<16x128xf32>
    %c0_78 = arith.constant 0 : index
    %c0_79 = arith.constant 0 : index
    %c0_80 = arith.constant 0 : index
    %109 = vector.load %arg3[%c0_78, %c0_79, %c0_80] : memref<2x16x128xf32, #tpu.memory_space<vmem>>, vector<1x16x128xf32>
    %110 = vector.shape_cast %109 : vector<1x16x128xf32> to vector<16x128xf32>
    %111 = vector.shape_cast %108 : vector<16x128xf32> to vector<1x16x128xf32>
    tpu.vector_store %arg3[%c0_78, %c0_79, %c0_80], %111 {strides = array<i32>} : memref<2x16x128xf32, #tpu.memory_space<vmem>>, vector<1x16x128xf32>,
    %112 = vector.extract_strided_slice %107 {offsets = [0, 128], sizes = [16, 128], strides = [1, 1]} : vector<16x256xf32> to vector<16x128xf32>
    %c1_81 = arith.constant 1 : index
    %c0_82 = arith.constant 0 : index
    %c0_83 = arith.constant 0 : index
    %113 = vector.load %arg3[%c1_81, %c0_82, %c0_83] : memref<2x16x128xf32, #tpu.memory_space<vmem>>, vector<1x16x128xf32>
    %114 = vector.shape_cast %113 : vector<1x16x128xf32> to vector<16x128xf32>
    %115 = vector.shape_cast %112 : vector<16x128xf32> to vector<1x16x128xf32>
    tpu.vector_store %arg3[%c1_81, %c0_82, %c0_83], %115 {strides = array<i32>} : memref<2x16x128xf32, #tpu.memory_space<vmem>>, vector<1x16x128xf32>,
    return
  }
  func.func @transform_0(%arg0: i32) -> (i32, i32, i32) {
    %c0_i32 = arith.constant 0 : i32
    %c0_i32_0 = arith.constant 0 : i32
    %c0_i32_1 = arith.constant 0 : i32
    return %arg0, %c0_i32, %c0_i32_0 : i32, i32, i32
  }
  func.func @transform_1(%arg0: i32) -> (i32, i32) {
    %c0_i32 = arith.constant 0 : i32
    %c0_i32_0 = arith.constant 0 : i32
    %c0_i32_1 = arith.constant 0 : i32
    return %c0_i32, %c0_i32_0 : i32, i32
  }
  func.func @transform_2(%arg0: i32) -> (i32, i32, i32) {
    %c0_i32 = arith.constant 0 : i32
    %c0_i32_0 = arith.constant 0 : i32
    %c0_i32_1 = arith.constant 0 : i32
    return %arg0, %c0_i32, %c0_i32_0 : i32, i32, i32
  }
}

</mosaic_0001>

<bundles_post_ra>
// kernel: tpu_custom_call.1
= control target key start
LH: loop header
LB: loop body
LE: loop exit
PB: predicated region body
PF: predicated region fallthrough
CT: control target
= control target key end

     0   :  { %7 = vsyncpa [#allocation4], 0  ;;  %s475_s0 = inlined_call_operand.hbm [shape: f32[2,4,128], index: 0, kind: input, shape index: {}]   ;;  %s476_s1 = inlined_call_operand.hbm [shape: f32[16,37], index: 1, kind: input, shape index: {}]   ;;  %s477_s2 = inlined_call_operand.hbm [shape: f32[2,16,128], index: 2, kind: output, shape index: {}]  }
   0x1   :  { %8 = vsyncpa [#allocation7], 0 }
   0x2   :  { %9 = vsyncpa [#allocation5], 0  ;;  %s377_s9 = smov [#allocation3]   ;;  %s305_s13 = scalar_lea.hbm %s475_s0, 128 }
   0x3   :  { %s15_s10 = sshll.u32 %s377_s9, 4  ;;  %p306_p0 = scmp.ne.s32.totalorder %s475_s0, %s305_s13  ;;  %s16_s10 = int_to_ptr.vmem [resolvable:$true] %s15_s10 }
   0x4   :  { %p309_p1 = scmp.lt.u32.totalorder %s305_s13, %s475_s0 }
   0x6   :  { %p311_p2 = pnand %p309_p1, %p306_p0 }
   0x8   :  { %314 = shalt.err (!%p311_p2)
}
   0x9   :  { %s315_s18 = scalar_lea.vmem %s16_s10, 128  ;;  %p320_p4 = scmp.lt.s32.totalorder %s16_s10, %s16_s10 }
   0xa   :  { %p316_p3 = scmp.ne.s32.totalorder %s16_s10, %s315_s18  ;;  %p321_p5 = scmp.lt.s32.totalorder %s315_s18, %s315_s18 }
   0xc   :  { %p322_p6 = por %p321_p5, %p320_p4 }
   0xe   :  { %p323_p7 = pnand %p322_p6, %p316_p3 }
  0x10   :  { %326 = shalt.err (!%p323_p7)
}
  0x11   :  { %s378_s19 = smov 64   ;;  %s379_s20 = smov 4  }
  0x12   :  { %21 = dma.hbm_to_vmem [thread:$0]  %s475_s0, 128, %s16_s10, [#allocation4], %s378_s19, %s378_s19, %s379_s20  }
  0x13   :  { %s380_s23 = smov [#allocation6]   ;;  %s327_s27 = scalar_lea.hbm %s476_s1, 256 }
  0x14   :  { %s27_s24 = sshll.u32 %s380_s23, 4  ;;  %p328_p8 = scmp.ne.s32.totalorder %s476_s1, %s327_s27  ;;  %s28_s24 = int_to_ptr.vmem [resolvable:$true] %s27_s24 }
  0x15   :  { %p331_p9 = scmp.lt.u32.totalorder %s327_s27, %s476_s1 }
  0x17   :  { %p333_p10 = pnand %p331_p9, %p328_p8 }
  0x19   :  { %336 = shalt.err (!%p333_p10)
}
  0x1a   :  { %s337_s4 = scalar_lea.vmem %s28_s24, 256  ;;  %p342_p12 = scmp.lt.s32.totalorder %s28_s24, %s28_s24 }
  0x1b   :  { %p338_p11 = scmp.ne.s32.totalorder %s28_s24, %s337_s4  ;;  %p343_p13 = scmp.lt.s32.totalorder %s337_s4, %s337_s4 }
  0x1d   :  { %p344_p0 = por %p343_p13, %p342_p12 }
  0x1f   :  { %p345_p1 = pnand %p344_p0, %p338_p11 }
  0x21   :  { %348 = shalt.err (!%p345_p1)
}
  0x22   :  { %s381_s0 = smov 128   ;;  %s382_s5 = smov 8  }
  0x23   :  { %33 = dma.hbm_to_vmem [thread:$0]  %s476_s1, 256, %s28_s24, [#allocation7], %s381_s0, %s381_s0, %s382_s5  }
  0x24   :  { %371 = dma.done.wait [#allocation4], 128  }
  0x25   :  { %372 = vsyncadd [#allocation4], 4294967168 }
  0x26   :  { %373 = dma.done.wait [#allocation7], 256  }
  0x27   :  { %374 = vsyncadd [#allocation7], 4294967040  ;;  %v40_v0 = vlaneseq  ;;  %v383_v1 = vmov 1.0   ;;  %v95_v2 = vld [vmem:[#allocation3 + $0x4] sm:$0xf]  ;;  %s384_s8 = smov 48  }
  0x28   :  { %v42_v3 = vld [vmem:[#allocation3] sm:$0xf]  ;;  %100 = vrot.lane.b32.xlu0 %v95_v2, %s384_s8  ;;  %118 = vst [vmem:[#allocation2 + $0x28] sm:$0xf] %v95_v2  ;;  %s385_s9 = smov 16   ;;  %s386_s1 = smov 32  }
  0x29   :  { %vm141_vm0 = vcmp.lt.s32.totalorder %v40_v0, 256  ;;  %48 = vrot.lane.b32.xlu1 %v42_v3, %s384_s8  ;;  %69 = vst [vmem:[#allocation2 + $0x20] sm:$0xf] %v42_v3  ;;  %s387_s10 = smov 112   ;;  %s388_s11 = smov 80   ;;  %v390_v4 = vmov 0.0  }
  0x2a   :  { %144 = vst.msk [vmem:[#allocation2 + $0x44] ss:$8 sm:$0x3] %vm141_vm0, %v383_v1  ;;  %s389_s12 = smov 96   ;;  %236 = vmatprep.mubr.f32.mxu0 %v390_v4  ;;  %242 = vmatprep.mubr.f32.mxu1 %v390_v4  ;;  %v438_v5 = vand.u32 127, %v40_v0  ;;  %vm165_vm9 = vcmask 1044480  }
  0x2b   :  { %v146_v57 = vld [vmem:[#allocation6] sm:$0xff]  ;;  %vm158_vm10 = vcmask 302080   ;;  %v147_v58 = vld [vmem:[#allocation6 + $0x8] sm:$0xff]  ;;  %s391_s13 = smov [#allocation8]  }
  0x2c   :  { %111 = vrot.lane.b32.xlu0 %v95_v2, %s385_s9  ;;  %vm50_vm1 = vcmp.ge.s32.totalorder %v438_v5, 48  ;;  %vm63_vm2 = vcmp.ge.s32.totalorder %v438_v5, 16  ;;  %vm45_vm3 = vcmp.ge.s32.totalorder %v438_v5, 64  ;;  %vm91_vm4 = vcmp.lt.s32.totalorder %v438_v5, 64  ;;  %s259_s14 = sshll.u32 %s391_s13, 4  ;;  %s260_s14 = int_to_ptr.vmem [resolvable:$true] %s259_s14 }
  0x2d   :  { %61 = vrot.lane.b32.xlu1 %v42_v3, %s385_s9  ;;  %vm58_vm5 = vcmp.ge.s32.totalorder %v438_v5, 32  ;;  %vm72_vm6 = vcmp.lt.s32.totalorder %v438_v5, 112  ;;  %vm85_vm7 = vcmp.lt.s32.totalorder %v438_v5, 80  ;;  %vm80_vm8 = vcmp.lt.s32.totalorder %v438_v5, 96  ;;  %s349_s15 = scalar_lea.vmem %s260_s14, 512  ;;  %p354_p3 = scmp.lt.s32.totalorder %s260_s14, %s260_s14 }
  0x2e   :  { %p350_p2 = scmp.ne.s32.totalorder %s260_s14, %s349_s15  ;;  %p355_p4 = scmp.lt.s32.totalorder %s349_s15, %s349_s15 }
  0x30   :  { %96 = vrot.lane.b32.xlu0 %v95_v2, %s378_s19  ;;  %p356_p5 = por %p355_p4, %p354_p3 }
  0x31   :  { %107 = vrot.lane.b32.xlu1 %v95_v2, %s386_s1 }
  0x32   :  { %p357_p6 = pnand %p356_p5, %p350_p2 }
  0x34   :  { %43 = vrot.lane.b32.xlu0 %v42_v3, %s378_s19 }
  0x35   :  { %56 = vrot.lane.b32.xlu1 %v42_v3, %s386_s1 }
  0x38   :  { %119 = vrot.lane.b32.xlu0 %v95_v2, %s387_s10 }
  0x39   :  { %130 = vrot.lane.b32.xlu1 %v95_v2, %s388_s11 }
  0x3c   :  { %70 = vrot.lane.b32.xlu0 %v42_v3, %s387_s10 }
  0x3d   :  { %83 = vrot.lane.b32.xlu1 %v42_v3, %s388_s11 }
  0x40   :  { %126 = vrot.lane.b32.xlu0 %v95_v2, %s389_s12 }
  0x41   :  { %78 = vrot.lane.b32.xlu1 %v42_v3, %s389_s12 }
  0x9a   :  { %v101_v6 = vpop.permute.xlu0 %100 }
  0x9b   :  { %v49_v7 = vpop.permute.xlu1 %48  ;;  %v102_v8 = vsel %vm50_vm1, %v101_v6, 0.0 }
  0x9c   :  { %v51_v9 = vsel %vm50_vm1, %v49_v7, 0.0  ;;  %v104_v10 = vrot.slane %v102_v8, 4 }
  0x9d   :  { %v53_v11 = vrot.slane %v51_v9, 4 }
  0x9e   :  { %106 = vst [vmem:[#allocation2 + $0x8] sm:$0xf0] %v104_v10  ;;  %v112_v12 = vpop.permute.xlu0 %111 }
  0x9f   :  { %55 = vst [vmem:[#allocation2] sm:$0xf0] %v53_v11  ;;  %v62_v13 = vpop.permute.xlu1 %61  ;;  %v113_v14 = vsel %vm63_vm2, %v112_v12, 0.0 }
  0xa0   :  { %v64_v15 = vsel %vm63_vm2, %v62_v13, 0.0  ;;  %v115_v16 = vrot.slane %v113_v14, 4 }
  0xa1   :  { %v66_v17 = vrot.slane %v64_v15, 4 }
  0xa2   :  { %117 = vst [vmem:[#allocation2 + $0x18] sm:$0xf0] %v115_v16  ;;  %v97_v18 = vpop.permute.xlu0 %96 }
  0xa3   :  { %68 = vst [vmem:[#allocation2 + $0x10] sm:$0xf0] %v66_v17  ;;  %v108_v19 = vpop.permute.xlu1 %107  ;;  %v98_v20 = vsel %vm45_vm3, %v97_v18, 0.0  ;;  %v137_v21 = vsel %vm91_vm4, %v97_v18, 0.0 }
  0xa4   :  { %v109_v22 = vsel %vm58_vm5, %v108_v19, 0.0  ;;  %99 = vst [vmem:[#allocation2 + $0x8] sm:$0xf] %v98_v20  ;;  %138 = vst [vmem:[#allocation2 + $0x48] sm:$0xf] %v137_v21 }
  0xa5   :  { %110 = vst [vmem:[#allocation2 + $0x18] sm:$0xf] %v109_v22 }
  0xa6   :  { %v44_v23 = vpop.permute.xlu0 %43 }
  0xa7   :  { %v57_v24 = vpop.permute.xlu1 %56  ;;  %v46_v25 = vsel %vm45_vm3, %v44_v23, 0.0  ;;  %v92_v26 = vsel %vm91_vm4, %v44_v23, 0.0 }
  0xa8   :  { %v59_v27 = vsel %vm58_vm5, %v57_v24, 0.0  ;;  %47 = vst [vmem:[#allocation2] sm:$0xf] %v46_v25  ;;  %93 = vst [vmem:[#allocation2 + $0x40] sm:$0xf] %v92_v26 }
  0xa9   :  { %60 = vst [vmem:[#allocation2 + $0x10] sm:$0xf] %v59_v27 }
  0xaa   :  { %v120_v28 = vpop.permute.xlu0 %119 }
  0xab   :  { %v131_v29 = vpop.permute.xlu1 %130  ;;  %v121_v30 = vsel %vm72_vm6, %v120_v28, 0.0  ;;  %v149_v32 = vld [vmem:[#allocation2 + $0x8] sm:$0xff] }
  0xac   :  { %v132_v31 = vsel %vm85_vm7, %v131_v29, 0.0  ;;  %v151_v33 = vld [vmem:[#allocation2 + $0x18] sm:$0xff]  ;;  %v123_v34 = vrot.slane %v121_v30, 4  ;;  %v157_v56 = vld [vmem:[#allocation2 + $0x48] sm:$0x1f] }
  0xad   :  { %v134_v35 = vrot.slane %v132_v31, 4  ;;  %v276_v36 = vpack.c.bf16 %v151_v33, %v149_v32 }
  0xae   :  { %125 = vst [vmem:[#allocation2 + $0x28] sm:$0xf0] %v123_v34  ;;  %v71_v37 = vpop.permute.xlu0 %70 }
  0xaf   :  { %136 = vst [vmem:[#allocation2 + $0x38] sm:$0xf0] %v134_v35  ;;  %277 = vmatprep.subr.bf16.mxu0 %v276_v36  ;;  %284 = vmatprep.subr.bf16.mxu1 %v276_v36  ;;  %v84_v38 = vpop.permute.xlu1 %83  ;;  %v73_v39 = vsel %vm72_vm6, %v71_v37, 0.0  ;;  %v148_v41 = vld [vmem:[#allocation2] sm:$0xff] }
  0xb0   :  { %v86_v40 = vsel %vm85_vm7, %v84_v38, 0.0  ;;  %v150_v42 = vld [vmem:[#allocation2 + $0x10] sm:$0xff]  ;;  %v75_v43 = vrot.slane %v73_v39, 4  ;;  %v156_v59 = vld [vmem:[#allocation2 + $0x40] sm:$0x1f] }
  0xb1   :  { %v88_v44 = vrot.slane %v86_v40, 4  ;;  %v278_v45 = vpack.c.bf16 %v150_v42, %v148_v41 }
  0xb2   :  { %77 = vst [vmem:[#allocation2 + $0x20] sm:$0xf0] %v75_v43  ;;  %v127_v46 = vpop.permute.xlu0 %126 }
  0xb3   :  { %90 = vst [vmem:[#allocation2 + $0x30] sm:$0xf0] %v88_v44  ;;  %279 = vmatpush1.bf16.msra.mxu0 %v278_v45  ;;  %287 = vmatpush1.bf16.msra.mxu1 %v278_v45  ;;  %v79_v47 = vpop.permute.xlu1 %78  ;;  %v128_v48 = vsel %vm80_vm8, %v127_v46, 0.0 }
  0xb4   :  { %v81_v49 = vsel %vm80_vm8, %v79_v47, 0.0  ;;  %129 = vst [vmem:[#allocation2 + $0x38] sm:$0xf] %v128_v48 }
  0xb5   :  { %82 = vst [vmem:[#allocation2 + $0x30] sm:$0xf] %v81_v49  ;;  %v153_v50 = vld [vmem:[#allocation2 + $0x28] sm:$0xff] }
  0xb9   :  { %v152_v52 = vld [vmem:[#allocation2 + $0x20] sm:$0xff] }
  0xbb   :  { %v155_v51 = vld [vmem:[#allocation2 + $0x38] sm:$0xff] }
  0xbc   :  { %v154_v53 = vld [vmem:[#allocation2 + $0x30] sm:$0xff]  ;;  %v280_v54 = vpack.c.bf16 %v155_v51, %v153_v50 }
  0xbd   :  { %v282_v55 = vpack.c.bf16 %v154_v53, %v152_v52 }
  0xbe   :  { %281 = vmatprep.subr.bf16.mxu0 %v280_v54  ;;  %285 = vmatprep.subr.bf16.mxu1 %v280_v54 }
  0xbf   :  { %283 = vmatpush1.bf16.msra.mxu0 %v282_v55  ;;  %288 = vmatpush1.bf16.msra.mxu1 %v282_v55 }
  0xc0   :  { %272 = vmatprep.subr.msk.mxu0 %vm165_vm9, %v157_v56  ;;  %286 = vmatprep.subr.msk.mxu1 %vm165_vm9, %v157_v56 }
  0xc3   :  { %273 = vmatpush1.msk.msra.mxu0 %vm165_vm9, %v156_v59  ;;  %289 = vmatpush1.msk.msra.mxu1 %vm165_vm9, %v156_v59 }
  0xc4   :  { %274 = vmatmul.mubr.msk.f32.vlgmr.msra.gmra.mrb[0].mxu0 %vm158_vm10, %v146_v57  ;;  %275 = vmatmul.mubr.msk.f32.vlgmr.msra.gmra.mrb[0].mxu1 %vm158_vm10, %v147_v58 }
 0x197   :  { %v238_v60 = vpop.f32.mrb[0].mxu0  ;;  %v244_v61 = vpop.f32.mrb[0].mxu1 }
 0x198   :  { %249 = vst [vmem:[#allocation8] sm:$0xff] %v238_v60  ;;  %250 = vst [vmem:[#allocation8 + $0x8] sm:$0xff] %v244_v61  ;;  %v240_v62 = vpop.f32.mrb[1].mxu0  ;;  %v246_v63 = vpop.f32.mrb[1].mxu1 }
 0x199   :  { %252 = vst [vmem:[#allocation8 + $0x10] sm:$0xff] %v240_v62  ;;  %253 = vst [vmem:[#allocation8 + $0x18] sm:$0xff] %v246_v63 }
 0x19a   :  { %360 = shalt.err (!%p357_p6)
}
 0x19b   :  { %s361_s18 = scalar_lea.hbm %s477_s2, 512 }
 0x19c   :  { %p362_p7 = scmp.ne.s32.totalorder %s477_s2, %s361_s18  ;;  %p365_p8 = scmp.lt.u32.totalorder %s361_s18, %s477_s2 }
 0x19e   :  { %p367_p9 = pnand %p365_p8, %p362_p7 }
 0x1a0   :  { %370 = shalt.err (!%p367_p9)
}
 0x1a1   :  { %265 = dma.vmem_to_hbm [thread:$0]  %s260_s14, 512, %s477_s2, [#allocation5], %s381_s0, %s381_s0, %s382_s5  }
 0x1a2   :  { %375 = dma.done.wait [#allocation5], 512  }
 0x1a3   :  { %376 = vsyncadd [#allocation5], 4294966784 }
 0x1a4   :  { %269 = vsyncpa [#allocation4], 1 }
 0x1a5   :  { %270 = vsyncpa [#allocation7], 1 }
 0x1a6   :  { %271 = vsyncpa [#allocation5], 1 }

</bundles_post_ra>
